<compile_context>
chip_gen: v7x
topology: tpu7x:2x2x1
jax: 0.10.0
libtpu: 0.0.40
codegen_flags: <defaults>
</compile_context>

<pallas_src>
import jax
import jax.numpy as jnp
import numpy as np
from jax.experimental import pallas as pl
from jax.experimental.pallas import tpu as pltpu

# -------------------- model hyper-parameters (small, deterministic) ---------
B = 2              # batch
N = 8              # query sequence length
L = 16             # key/value sequence length
DQ = 32            # num_q_input_channels
DKV = 64           # num_kv_input_channels
H = 4              # num_heads
QK = DQ            # num_qk_channels (defaults to num_q_input_channels)
V = QK             # num_v_channels  (defaults to num_qk_channels)
OUT = DQ           # num_output_channels (defaults to num_q_input_channels)
C_QK = QK // H     # per-head qk channels
C_V = V // H       # per-head v channels
DP_SCALE = C_QK ** (-0.5)
LN_EPS = 1e-5


# ------------------------------- Pallas kernel ------------------------------
def cross_attention_kernel(xq_ref, xkv_ref, pq_ref, pkv_ref, po_ref, out_ref):
    # xq_ref : (B*N, DQ)        query input (flattened batch)
    # xkv_ref: (B*L, DKV)       key/value input (flattened batch)
    # pq_ref : (DQ+1, QK)       [gamma_q-folded Wq ; folded bq]
    # pkv_ref: (DKV+1, QK+V)    [gamma_kv-folded (Wk | Wv) ; folded (bk | bv)]
    # po_ref : (V+1, OUT)       [Wo ; bo]
    # out_ref: (B*N, OUT)

    # --- LayerNorm (affine part folded into the projection weights) ---------
    def _norm(x):
        mean = jnp.mean(x, axis=-1, keepdims=True)
        xc = x - mean
        var = jnp.mean(xc * xc, axis=-1, keepdims=True)
        return xc * jax.lax.rsqrt(var + LN_EPS)

    xq = _norm(xq_ref[...])      # (B*N, DQ)
    xkv = _norm(xkv_ref[...])    # (B*L, DKV)

    # --- projections: q, and fused [k | v] (one MXU push each) --------------
    pq = pq_ref[...]
    q = jnp.dot(xq, pq[:DQ], preferred_element_type=jnp.float32) + pq[DQ:DQ + 1]

    pkv = pkv_ref[...]
    kv = jnp.dot(xkv, pkv[:DKV], preferred_element_type=jnp.float32) + pkv[DKV:DKV + 1]

    # cheap leading-dim splits (no lane movement)
    q3 = q.reshape(B, N, QK)            # (B, N, QK)
    k3 = kv[:, :QK].reshape(B, L, QK)   # (B, L, QK)
    v3 = kv[:, QK:].reshape(B, L, V)    # (B, L, V)

    po = po_ref[...]                    # (V+1, OUT)

    # --- per-head attention, batched over B; accumulate through W_o slices --
    acc = jnp.zeros((B * N, OUT), jnp.float32)
    for h in range(H):
        qh = q3[:, :, h * C_QK:(h + 1) * C_QK]     # (B, N, C_QK)
        kh = k3[:, :, h * C_QK:(h + 1) * C_QK]     # (B, L, C_QK)
        vh = v3[:, :, h * C_V:(h + 1) * C_V]       # (B, L, C_V)

        s = jnp.einsum('bnc,bmc->bnm', qh, kh,
                       preferred_element_type=jnp.float32) * DP_SCALE   # (B, N, L)
        s = s - jnp.max(s, axis=-1, keepdims=True)
        p = jnp.exp(s)
        p = p * pl.reciprocal(jnp.sum(p, axis=-1, keepdims=True), approx=True)

        oh = jnp.einsum('bnm,bmc->bnc', p, vh,
                        preferred_element_type=jnp.float32)             # (B, N, C_V)

        # head output * its sublane-row slice of W_o, accumulated (no concat)
        acc = acc + jnp.dot(oh.reshape(B * N, C_V),
                            po[h * C_V:(h + 1) * C_V],
                            preferred_element_type=jnp.float32)

    out_ref[...] = (acc + po[V:V + 1]).astype(out_ref.dtype)


# ------------------------- host-side fold / pack -----------------------------
def pack_params(gamma_q, beta_q, gamma_kv, beta_kv,
                wq, bq, wk, bk, wv, bv, wo, bo):
    """Fold LayerNorm affine into the projections and pack into 3 arrays.

    (norm(x)*g + b) @ W + c  ==  norm(x) @ (g[:,None]*W) + (b @ W + c)
    """
    wq_f = gamma_q[:, None] * wq
    bq_f = beta_q @ wq + bq
    wk_f = gamma_kv[:, None] * wk
    bk_f = beta_kv @ wk + bk
    wv_f = gamma_kv[:, None] * wv
    bv_f = beta_kv @ wv + bv

    p_q = jnp.concatenate([wq_f, bq_f[None, :]], axis=0)                     # (DQ+1, QK)
    p_kv = jnp.concatenate(
        [jnp.concatenate([wk_f, wv_f], axis=1),
         jnp.concatenate([bk_f, bv_f])[None, :]], axis=0)                    # (DKV+1, QK+V)
    p_o = jnp.concatenate([wo, bo[None, :]], axis=0)                         # (V+1, OUT)
    return p_q, p_kv, p_o


# ------------------------------- wrapper -------------------------------------
@jax.jit
def cross_attention(x_q, x_kv, p_q, p_kv, p_o):
    xq2 = x_q.reshape(B * N, DQ)
    xkv2 = x_kv.reshape(B * L, DKV)
    out2 = pl.pallas_call(
        cross_attention_kernel,
        out_shape=jax.ShapeDtypeStruct((B * N, OUT), x_q.dtype),
        grid_spec=pltpu.PrefetchScalarGridSpec(
            num_scalar_prefetch=0,
            grid=(1,),
            in_specs=[
                pl.BlockSpec((B * N, DQ), lambda i: (0, 0)),       # x_q (flat)
                pl.BlockSpec((B * L, DKV), lambda i: (0, 0)),      # x_kv (flat)
                pl.BlockSpec((DQ + 1, QK), lambda i: (0, 0)),      # packed q proj
                pl.BlockSpec((DKV + 1, QK + V), lambda i: (0, 0)),  # packed kv proj
                pl.BlockSpec((V + 1, OUT), lambda i: (0, 0)),      # packed o proj
            ],
            out_specs=pl.BlockSpec((B * N, OUT), lambda i: (0, 0)),
        ),
        compiler_params=pltpu.CompilerParams(
            dimension_semantics=("arbitrary",),
        ),
    )(xq2, xkv2, p_q, p_kv, p_o)
    return out2.reshape(B, N, OUT)


# ---------------------------- pure-JAX reference ------------------------------
def reference(x_q, x_kv, gamma_q, beta_q, gamma_kv, beta_kv,
              wq, bq, wk, bk, wv, bv, wo, bo):
    def ln(x, g, b):
        m = jnp.mean(x, -1, keepdims=True)
        v = jnp.mean((x - m) ** 2, -1, keepdims=True)
        return (x - m) / jnp.sqrt(v + LN_EPS) * g + b

    xq = ln(x_q, gamma_q, beta_q)
    xkv = ln(x_kv, gamma_kv, beta_kv)
    q = xq @ wq + bq
    k = xkv @ wk + bk
    v = xkv @ wv + bv
    qh = q.reshape(B, N, H, C_QK).transpose(0, 2, 1, 3)
    kh = k.reshape(B, L, H, C_QK).transpose(0, 2, 1, 3)
    vh = v.reshape(B, L, H, C_V).transpose(0, 2, 1, 3)
    attn = jnp.einsum('bhic,bhjc->bhij', qh, kh) * DP_SCALE
    attn = jax.nn.softmax(attn, axis=-1)
    o = jnp.einsum('bhij,bhjc->bhic', attn, vh)
    o = o.transpose(0, 2, 1, 3).reshape(B, N, V)
    return o @ wo + bo


# ---------------------------------- main --------------------------------------
if __name__ == "__main__":
    key = jax.random.PRNGKey(0)
    keys = jax.random.split(key, 14)

    x_q = jax.random.normal(keys[0], (B, N, DQ), dtype=jnp.float32)
    x_kv = jax.random.normal(keys[1], (B, L, DKV), dtype=jnp.float32)

    gamma_q = 1.0 + 0.01 * jax.random.normal(keys[2], (DQ,), dtype=jnp.float32)
    beta_q = 0.01 * jax.random.normal(keys[3], (DQ,), dtype=jnp.float32)
    gamma_kv = 1.0 + 0.01 * jax.random.normal(keys[4], (DKV,), dtype=jnp.float32)
    beta_kv = 0.01 * jax.random.normal(keys[5], (DKV,), dtype=jnp.float32)

    scale = 0.05
    wq = scale * jax.random.normal(keys[6], (DQ, QK), dtype=jnp.float32)
    bq = scale * jax.random.normal(keys[7], (QK,), dtype=jnp.float32)
    wk = scale * jax.random.normal(keys[8], (DKV, QK), dtype=jnp.float32)
    bk = scale * jax.random.normal(keys[9], (QK,), dtype=jnp.float32)
    wv = scale * jax.random.normal(keys[10], (DKV, V), dtype=jnp.float32)
    bv = scale * jax.random.normal(keys[11], (V,), dtype=jnp.float32)
    wo = scale * jax.random.normal(keys[12], (V, OUT), dtype=jnp.float32)
    bo = scale * jax.random.normal(keys[13], (OUT,), dtype=jnp.float32)

    p_q, p_kv, p_o = pack_params(gamma_q, beta_q, gamma_kv, beta_kv,
                                 wq, bq, wk, bk, wv, bv, wo, bo)

    out = cross_attention(x_q, x_kv, p_q, p_kv, p_o)
    out = jax.block_until_ready(out)

    ref = reference(x_q, x_kv, gamma_q, beta_q, gamma_kv, beta_kv,
                    wq, bq, wk, bk, wv, bv, wo, bo)

    # Tolerance slightly looser than 1e-4 because of the approx (EUP) softmax
    # reciprocal and the LayerNorm-affine folding reassociation.
    np.testing.assert_allclose(np.asarray(out), np.asarray(ref),
                               rtol=2e-3, atol=2e-3)

    print("KERNEL_OK")
</pallas_src>

<mosaic_0001>
module attributes {stable_mosaic.version = 11 : i64} {
  func.func @cross_attention_kernel(%arg0: i32, %arg1: memref<16x32xf32, #tpu.memory_space<vmem>>, %arg2: memref<32x64xf32, #tpu.memory_space<vmem>>, %arg3: memref<33x32xf32, #tpu.memory_space<vmem>>, %arg4: memref<65x64xf32, #tpu.memory_space<vmem>>, %arg5: memref<33x32xf32, #tpu.memory_space<vmem>>, %arg6: memref<16x32xf32, #tpu.memory_space<vmem>>) attributes {dimension_semantics = [#tpu.dimension_semantics<arbitrary>], iteration_bounds = array<i64: 1>, scalar_prefetch = 0 : i64, scratch_operands = 0 : i64, tpu.core_type = #tpu.core_type<tc>, window_params = [{pipeline_mode = #tpu.pipeline_mode<synchronous>, transform_indices = @transform_0, window_bounds = array<i64: 16, 32>}, {pipeline_mode = #tpu.pipeline_mode<synchronous>, transform_indices = @transform_1, window_bounds = array<i64: 32, 64>}, {pipeline_mode = #tpu.pipeline_mode<synchronous>, transform_indices = @transform_2, window_bounds = array<i64: 33, 32>}, {pipeline_mode = #tpu.pipeline_mode<synchronous>, transform_indices = @transform_3, window_bounds = array<i64: 65, 64>}, {pipeline_mode = #tpu.pipeline_mode<synchronous>, transform_indices = @transform_4, window_bounds = array<i64: 33, 32>}, {pipeline_mode = #tpu.pipeline_mode<synchronous>, transform_indices = @transform_5, window_bounds = array<i64: 16, 32>}]} {
    %c0 = arith.constant 0 : index
    %c0_0 = arith.constant 0 : index
    %0 = vector.load %arg1[%c0, %c0_0] : memref<16x32xf32, #tpu.memory_space<vmem>>, vector<16x32xf32>
    %cst = arith.constant dense<0.000000e+00> : vector<16xf32>
    %1 = vector.multi_reduction <add>, %0, %cst [1] : vector<16x32xf32> to vector<16xf32>
    %2 = vector.shape_cast %1 : vector<16xf32> to vector<16x1xf32>
    %cst_1 = arith.constant 3.200000e+01 : f32
    %3 = vector.broadcast %cst_1 : f32 to vector<16x1xf32>
    %4 = arith.divf %2, %3 : vector<16x1xf32>
    %5 = vector.broadcast %4 : vector<16x1xf32> to vector<16x32xf32>
    %6 = arith.subf %0, %5 : vector<16x32xf32>
    %7 = arith.mulf %6, %6 : vector<16x32xf32>
    %cst_2 = arith.constant dense<0.000000e+00> : vector<16xf32>
    %8 = vector.multi_reduction <add>, %7, %cst_2 [1] : vector<16x32xf32> to vector<16xf32>
    %9 = vector.shape_cast %8 : vector<16xf32> to vector<16x1xf32>
    %cst_3 = arith.constant 3.200000e+01 : f32
    %10 = vector.broadcast %cst_3 : f32 to vector<16x1xf32>
    %11 = arith.divf %9, %10 : vector<16x1xf32>
    %cst_4 = arith.constant 9.99999974E-6 : f32
    %12 = vector.broadcast %cst_4 : f32 to vector<16x1xf32>
    %13 = arith.addf %11, %12 : vector<16x1xf32>
    %14 = math.rsqrt %13 : vector<16x1xf32>
    %15 = vector.broadcast %14 : vector<16x1xf32> to vector<16x32xf32>
    %16 = arith.mulf %6, %15 : vector<16x32xf32>
    %c0_5 = arith.constant 0 : index
    %c0_6 = arith.constant 0 : index
    %17 = vector.load %arg2[%c0_5, %c0_6] : memref<32x64xf32, #tpu.memory_space<vmem>>, vector<32x64xf32>
    %cst_7 = arith.constant dense<0.000000e+00> : vector<32xf32>
    %18 = vector.multi_reduction <add>, %17, %cst_7 [1] : vector<32x64xf32> to vector<32xf32>
    %19 = vector.shape_cast %18 : vector<32xf32> to vector<32x1xf32>
    %cst_8 = arith.constant 6.400000e+01 : f32
    %20 = vector.broadcast %cst_8 : f32 to vector<32x1xf32>
    %21 = arith.divf %19, %20 : vector<32x1xf32>
    %22 = vector.broadcast %21 : vector<32x1xf32> to vector<32x64xf32>
    %23 = arith.subf %17, %22 : vector<32x64xf32>
    %24 = arith.mulf %23, %23 : vector<32x64xf32>
    %cst_9 = arith.constant dense<0.000000e+00> : vector<32xf32>
    %25 = vector.multi_reduction <add>, %24, %cst_9 [1] : vector<32x64xf32> to vector<32xf32>
    %26 = vector.shape_cast %25 : vector<32xf32> to vector<32x1xf32>
    %cst_10 = arith.constant 6.400000e+01 : f32
    %27 = vector.broadcast %cst_10 : f32 to vector<32x1xf32>
    %28 = arith.divf %26, %27 : vector<32x1xf32>
    %cst_11 = arith.constant 9.99999974E-6 : f32
    %29 = vector.broadcast %cst_11 : f32 to vector<32x1xf32>
    %30 = arith.addf %28, %29 : vector<32x1xf32>
    %31 = math.rsqrt %30 : vector<32x1xf32>
    %32 = vector.broadcast %31 : vector<32x1xf32> to vector<32x64xf32>
    %33 = arith.mulf %23, %32 : vector<32x64xf32>
    %c0_12 = arith.constant 0 : index
    %c0_13 = arith.constant 0 : index
    %34 = vector.load %arg3[%c0_12, %c0_13] : memref<33x32xf32, #tpu.memory_space<vmem>>, vector<33x32xf32>
    %35 = vector.extract_strided_slice %34 {offsets = [0, 0], sizes = [32, 32], strides = [1, 1]} : vector<33x32xf32> to vector<32x32xf32>
    %cst_14 = arith.constant dense<0.000000e+00> : vector<16x32xf32>
    %36 = tpu.matmul %16, %35, %cst_14 {dimension_numbers = #tpu.dot_dimension_numbers<[1], [0], [0], [1], [0, 0, 1, 1], [], []>} : vector<16x32xf32>, vector<32x32xf32>, vector<16x32xf32> -> vector<16x32xf32>
    %37 = vector.extract_strided_slice %34 {offsets = [32, 0], sizes = [1, 32], strides = [1, 1]} : vector<33x32xf32> to vector<1x32xf32>
    %38 = vector.broadcast %37 : vector<1x32xf32> to vector<16x32xf32>
    %39 = arith.addf %36, %38 : vector<16x32xf32>
    %c0_15 = arith.constant 0 : index
    %c0_16 = arith.constant 0 : index
    %40 = vector.load %arg4[%c0_15, %c0_16] : memref<65x64xf32, #tpu.memory_space<vmem>>, vector<65x64xf32>
    %41 = vector.extract_strided_slice %40 {offsets = [0, 0], sizes = [64, 64], strides = [1, 1]} : vector<65x64xf32> to vector<64x64xf32>
    %cst_17 = arith.constant dense<0.000000e+00> : vector<32x64xf32>
    %42 = tpu.matmul %33, %41, %cst_17 {dimension_numbers = #tpu.dot_dimension_numbers<[1], [0], [0], [1], [0, 0, 1, 1], [], []>} : vector<32x64xf32>, vector<64x64xf32>, vector<32x64xf32> -> vector<32x64xf32>
    %43 = vector.extract_strided_slice %40 {offsets = [64, 0], sizes = [1, 64], strides = [1, 1]} : vector<65x64xf32> to vector<1x64xf32>
    %44 = vector.broadcast %43 : vector<1x64xf32> to vector<32x64xf32>
    %45 = arith.addf %42, %44 : vector<32x64xf32>
    %46 = vector.shape_cast %39 : vector<16x32xf32> to vector<2x8x32xf32>
    %47 = vector.extract_strided_slice %45 {offsets = [0, 0], sizes = [32, 32], strides = [1, 1]} : vector<32x64xf32> to vector<32x32xf32>
    %48 = vector.shape_cast %47 : vector<32x32xf32> to vector<2x16x32xf32>
    %49 = vector.extract_strided_slice %45 {offsets = [0, 32], sizes = [32, 32], strides = [1, 1]} : vector<32x64xf32> to vector<32x32xf32>
    %50 = vector.shape_cast %49 : vector<32x32xf32> to vector<2x16x32xf32>
    %c0_18 = arith.constant 0 : index
    %c0_19 = arith.constant 0 : index
    %51 = vector.load %arg5[%c0_18, %c0_19] : memref<33x32xf32, #tpu.memory_space<vmem>>, vector<33x32xf32>
    %cst_20 = arith.constant 0.000000e+00 : f32
    %52 = vector.broadcast %cst_20 : f32 to vector<16x32xf32>
    %53 = vector.extract_strided_slice %46 {offsets = [0, 0, 0], sizes = [2, 8, 8], strides = [1, 1, 1]} : vector<2x8x32xf32> to vector<2x8x8xf32>
    %54 = vector.extract_strided_slice %48 {offsets = [0, 0, 0], sizes = [2, 16, 8], strides = [1, 1, 1]} : vector<2x16x32xf32> to vector<2x16x8xf32>
    %55 = vector.extract_strided_slice %50 {offsets = [0, 0, 0], sizes = [2, 16, 8], strides = [1, 1, 1]} : vector<2x16x32xf32> to vector<2x16x8xf32>
    "tpu.trace_start"() <{level = 10 : i32, message = "bnc,bmc->bnm"}> : () -> ()
    %cst_21 = arith.constant dense<0.000000e+00> : vector<2x8x16xf32>
    %56 = tpu.matmul %53, %54, %cst_21 {dimension_numbers = #tpu.dot_dimension_numbers<[2], [2], [1], [1], [0, 0, 0, 1, 1, 1], [0], [0]>} : vector<2x8x8xf32>, vector<2x16x8xf32>, vector<2x8x16xf32> -> vector<2x8x16xf32>
    "tpu.trace_stop"() : () -> ()
    %cst_22 = arith.constant 0.353553385 : f32
    %57 = vector.broadcast %cst_22 : f32 to vector<2x8x16xf32>
    %58 = arith.mulf %56, %57 : vector<2x8x16xf32>
    %cst_23 = arith.constant dense<0xFF800000> : vector<2x8xf32>
    %59 = vector.multi_reduction <maximumf>, %58, %cst_23 [2] : vector<2x8x16xf32> to vector<2x8xf32>
    %60 = vector.shape_cast %59 : vector<2x8xf32> to vector<2x8x1xf32>
    %61 = vector.broadcast %60 : vector<2x8x1xf32> to vector<2x8x16xf32>
    %62 = arith.subf %58, %61 : vector<2x8x16xf32>
    %63 = math.exp %62 : vector<2x8x16xf32>
    %cst_24 = arith.constant dense<0.000000e+00> : vector<2x8xf32>
    %64 = vector.multi_reduction <add>, %63, %cst_24 [2] : vector<2x8x16xf32> to vector<2x8xf32>
    %65 = vector.shape_cast %64 : vector<2x8xf32> to vector<2x8x1xf32>
    %66 = tpu.reciprocal %65 {approx = true} : vector<2x8x1xf32> -> vector<2x8x1xf32>
    %67 = vector.broadcast %66 : vector<2x8x1xf32> to vector<2x8x16xf32>
    %68 = arith.mulf %63, %67 : vector<2x8x16xf32>
    "tpu.trace_start"() <{level = 10 : i32, message = "bnm,bmc->bnc"}> : () -> ()
    %cst_25 = arith.constant dense<0.000000e+00> : vector<2x8x8xf32>
    %69 = tpu.matmul %68, %55, %cst_25 {dimension_numbers = #tpu.dot_dimension_numbers<[2], [1], [1], [2], [0, 0, 0, 1, 1, 2], [0], [0]>} : vector<2x8x16xf32>, vector<2x16x8xf32>, vector<2x8x8xf32> -> vector<2x8x8xf32>
    "tpu.trace_stop"() : () -> ()
    %70 = vector.shape_cast %69 : vector<2x8x8xf32> to vector<16x8xf32>
    %71 = vector.extract_strided_slice %51 {offsets = [0, 0], sizes = [8, 32], strides = [1, 1]} : vector<33x32xf32> to vector<8x32xf32>
    %cst_26 = arith.constant dense<0.000000e+00> : vector<16x32xf32>
    %72 = tpu.matmul %70, %71, %cst_26 {dimension_numbers = #tpu.dot_dimension_numbers<[1], [0], [0], [1], [0, 0, 1, 1], [], []>} : vector<16x8xf32>, vector<8x32xf32>, vector<16x32xf32> -> vector<16x32xf32>
    %73 = arith.addf %52, %72 : vector<16x32xf32>
    %74 = vector.extract_strided_slice %46 {offsets = [0, 0, 8], sizes = [2, 8, 8], strides = [1, 1, 1]} : vector<2x8x32xf32> to vector<2x8x8xf32>
    %75 = vector.extract_strided_slice %48 {offsets = [0, 0, 8], sizes = [2, 16, 8], strides = [1, 1, 1]} : vector<2x16x32xf32> to vector<2x16x8xf32>
    %76 = vector.extract_strided_slice %50 {offsets = [0, 0, 8], sizes = [2, 16, 8], strides = [1, 1, 1]} : vector<2x16x32xf32> to vector<2x16x8xf32>
    "tpu.trace_start"() <{level = 10 : i32, message = "bnc,bmc->bnm"}> : () -> ()
    %cst_27 = arith.constant dense<0.000000e+00> : vector<2x8x16xf32>
    %77 = tpu.matmul %74, %75, %cst_27 {dimension_numbers = #tpu.dot_dimension_numbers<[2], [2], [1], [1], [0, 0, 0, 1, 1, 1], [0], [0]>} : vector<2x8x8xf32>, vector<2x16x8xf32>, vector<2x8x16xf32> -> vector<2x8x16xf32>
    "tpu.trace_stop"() : () -> ()
    %cst_28 = arith.constant 0.353553385 : f32
    %78 = vector.broadcast %cst_28 : f32 to vector<2x8x16xf32>
    %79 = arith.mulf %77, %78 : vector<2x8x16xf32>
    %cst_29 = arith.constant dense<0xFF800000> : vector<2x8xf32>
    %80 = vector.multi_reduction <maximumf>, %79, %cst_29 [2] : vector<2x8x16xf32> to vector<2x8xf32>
    %81 = vector.shape_cast %80 : vector<2x8xf32> to vector<2x8x1xf32>
    %82 = vector.broadcast %81 : vector<2x8x1xf32> to vector<2x8x16xf32>
    %83 = arith.subf %79, %82 : vector<2x8x16xf32>
    %84 = math.exp %83 : vector<2x8x16xf32>
    %cst_30 = arith.constant dense<0.000000e+00> : vector<2x8xf32>
    %85 = vector.multi_reduction <add>, %84, %cst_30 [2] : vector<2x8x16xf32> to vector<2x8xf32>
    %86 = vector.shape_cast %85 : vector<2x8xf32> to vector<2x8x1xf32>
    %87 = tpu.reciprocal %86 {approx = true} : vector<2x8x1xf32> -> vector<2x8x1xf32>
    %88 = vector.broadcast %87 : vector<2x8x1xf32> to vector<2x8x16xf32>
    %89 = arith.mulf %84, %88 : vector<2x8x16xf32>
    "tpu.trace_start"() <{level = 10 : i32, message = "bnm,bmc->bnc"}> : () -> ()
    %cst_31 = arith.constant dense<0.000000e+00> : vector<2x8x8xf32>
    %90 = tpu.matmul %89, %76, %cst_31 {dimension_numbers = #tpu.dot_dimension_numbers<[2], [1], [1], [2], [0, 0, 0, 1, 1, 2], [0], [0]>} : vector<2x8x16xf32>, vector<2x16x8xf32>, vector<2x8x8xf32> -> vector<2x8x8xf32>
    "tpu.trace_stop"() : () -> ()
    %91 = vector.shape_cast %90 : vector<2x8x8xf32> to vector<16x8xf32>
    %92 = vector.extract_strided_slice %51 {offsets = [8, 0], sizes = [8, 32], strides = [1, 1]} : vector<33x32xf32> to vector<8x32xf32>
    %cst_32 = arith.constant dense<0.000000e+00> : vector<16x32xf32>
    %93 = tpu.matmul %91, %92, %cst_32 {dimension_numbers = #tpu.dot_dimension_numbers<[1], [0], [0], [1], [0, 0, 1, 1], [], []>} : vector<16x8xf32>, vector<8x32xf32>, vector<16x32xf32> -> vector<16x32xf32>
    %94 = arith.addf %73, %93 : vector<16x32xf32>
    %95 = vector.extract_strided_slice %46 {offsets = [0, 0, 16], sizes = [2, 8, 8], strides = [1, 1, 1]} : vector<2x8x32xf32> to vector<2x8x8xf32>
    %96 = vector.extract_strided_slice %48 {offsets = [0, 0, 16], sizes = [2, 16, 8], strides = [1, 1, 1]} : vector<2x16x32xf32> to vector<2x16x8xf32>
    %97 = vector.extract_strided_slice %50 {offsets = [0, 0, 16], sizes = [2, 16, 8], strides = [1, 1, 1]} : vector<2x16x32xf32> to vector<2x16x8xf32>
    "tpu.trace_start"() <{level = 10 : i32, message = "bnc,bmc->bnm"}> : () -> ()
    %cst_33 = arith.constant dense<0.000000e+00> : vector<2x8x16xf32>
    %98 = tpu.matmul %95, %96, %cst_33 {dimension_numbers = #tpu.dot_dimension_numbers<[2], [2], [1], [1], [0, 0, 0, 1, 1, 1], [0], [0]>} : vector<2x8x8xf32>, vector<2x16x8xf32>, vector<2x8x16xf32> -> vector<2x8x16xf32>
    "tpu.trace_stop"() : () -> ()
    %cst_34 = arith.constant 0.353553385 : f32
    %99 = vector.broadcast %cst_34 : f32 to vector<2x8x16xf32>
    %100 = arith.mulf %98, %99 : vector<2x8x16xf32>
    %cst_35 = arith.constant dense<0xFF800000> : vector<2x8xf32>
    %101 = vector.multi_reduction <maximumf>, %100, %cst_35 [2] : vector<2x8x16xf32> to vector<2x8xf32>
    %102 = vector.shape_cast %101 : vector<2x8xf32> to vector<2x8x1xf32>
    %103 = vector.broadcast %102 : vector<2x8x1xf32> to vector<2x8x16xf32>
    %104 = arith.subf %100, %103 : vector<2x8x16xf32>
    %105 = math.exp %104 : vector<2x8x16xf32>
    %cst_36 = arith.constant dense<0.000000e+00> : vector<2x8xf32>
    %106 = vector.multi_reduction <add>, %105, %cst_36 [2] : vector<2x8x16xf32> to vector<2x8xf32>
    %107 = vector.shape_cast %106 : vector<2x8xf32> to vector<2x8x1xf32>
    %108 = tpu.reciprocal %107 {approx = true} : vector<2x8x1xf32> -> vector<2x8x1xf32>
    %109 = vector.broadcast %108 : vector<2x8x1xf32> to vector<2x8x16xf32>
    %110 = arith.mulf %105, %109 : vector<2x8x16xf32>
    "tpu.trace_start"() <{level = 10 : i32, message = "bnm,bmc->bnc"}> : () -> ()
    %cst_37 = arith.constant dense<0.000000e+00> : vector<2x8x8xf32>
    %111 = tpu.matmul %110, %97, %cst_37 {dimension_numbers = #tpu.dot_dimension_numbers<[2], [1], [1], [2], [0, 0, 0, 1, 1, 2], [0], [0]>} : vector<2x8x16xf32>, vector<2x16x8xf32>, vector<2x8x8xf32> -> vector<2x8x8xf32>
    "tpu.trace_stop"() : () -> ()
    %112 = vector.shape_cast %111 : vector<2x8x8xf32> to vector<16x8xf32>
    %113 = vector.extract_strided_slice %51 {offsets = [16, 0], sizes = [8, 32], strides = [1, 1]} : vector<33x32xf32> to vector<8x32xf32>
    %cst_38 = arith.constant dense<0.000000e+00> : vector<16x32xf32>
    %114 = tpu.matmul %112, %113, %cst_38 {dimension_numbers = #tpu.dot_dimension_numbers<[1], [0], [0], [1], [0, 0, 1, 1], [], []>} : vector<16x8xf32>, vector<8x32xf32>, vector<16x32xf32> -> vector<16x32xf32>
    %115 = arith.addf %94, %114 : vector<16x32xf32>
    %116 = vector.extract_strided_slice %46 {offsets = [0, 0, 24], sizes = [2, 8, 8], strides = [1, 1, 1]} : vector<2x8x32xf32> to vector<2x8x8xf32>
    %117 = vector.extract_strided_slice %48 {offsets = [0, 0, 24], sizes = [2, 16, 8], strides = [1, 1, 1]} : vector<2x16x32xf32> to vector<2x16x8xf32>
    %118 = vector.extract_strided_slice %50 {offsets = [0, 0, 24], sizes = [2, 16, 8], strides = [1, 1, 1]} : vector<2x16x32xf32> to vector<2x16x8xf32>
    "tpu.trace_start"() <{level = 10 : i32, message = "bnc,bmc->bnm"}> : () -> ()
    %cst_39 = arith.constant dense<0.000000e+00> : vector<2x8x16xf32>
    %119 = tpu.matmul %116, %117, %cst_39 {dimension_numbers = #tpu.dot_dimension_numbers<[2], [2], [1], [1], [0, 0, 0, 1, 1, 1], [0], [0]>} : vector<2x8x8xf32>, vector<2x16x8xf32>, vector<2x8x16xf32> -> vector<2x8x16xf32>
    "tpu.trace_stop"() : () -> ()
    %cst_40 = arith.constant 0.353553385 : f32
    %120 = vector.broadcast %cst_40 : f32 to vector<2x8x16xf32>
    %121 = arith.mulf %119, %120 : vector<2x8x16xf32>
    %cst_41 = arith.constant dense<0xFF800000> : vector<2x8xf32>
    %122 = vector.multi_reduction <maximumf>, %121, %cst_41 [2] : vector<2x8x16xf32> to vector<2x8xf32>
    %123 = vector.shape_cast %122 : vector<2x8xf32> to vector<2x8x1xf32>
    %124 = vector.broadcast %123 : vector<2x8x1xf32> to vector<2x8x16xf32>
    %125 = arith.subf %121, %124 : vector<2x8x16xf32>
    %126 = math.exp %125 : vector<2x8x16xf32>
    %cst_42 = arith.constant dense<0.000000e+00> : vector<2x8xf32>
    %127 = vector.multi_reduction <add>, %126, %cst_42 [2] : vector<2x8x16xf32> to vector<2x8xf32>
    %128 = vector.shape_cast %127 : vector<2x8xf32> to vector<2x8x1xf32>
    %129 = tpu.reciprocal %128 {approx = true} : vector<2x8x1xf32> -> vector<2x8x1xf32>
    %130 = vector.broadcast %129 : vector<2x8x1xf32> to vector<2x8x16xf32>
    %131 = arith.mulf %126, %130 : vector<2x8x16xf32>
    "tpu.trace_start"() <{level = 10 : i32, message = "bnm,bmc->bnc"}> : () -> ()
    %cst_43 = arith.constant dense<0.000000e+00> : vector<2x8x8xf32>
    %132 = tpu.matmul %131, %118, %cst_43 {dimension_numbers = #tpu.dot_dimension_numbers<[2], [1], [1], [2], [0, 0, 0, 1, 1, 2], [0], [0]>} : vector<2x8x16xf32>, vector<2x16x8xf32>, vector<2x8x8xf32> -> vector<2x8x8xf32>
    "tpu.trace_stop"() : () -> ()
    %133 = vector.shape_cast %132 : vector<2x8x8xf32> to vector<16x8xf32>
    %134 = vector.extract_strided_slice %51 {offsets = [24, 0], sizes = [8, 32], strides = [1, 1]} : vector<33x32xf32> to vector<8x32xf32>
    %cst_44 = arith.constant dense<0.000000e+00> : vector<16x32xf32>
    %135 = tpu.matmul %133, %134, %cst_44 {dimension_numbers = #tpu.dot_dimension_numbers<[1], [0], [0], [1], [0, 0, 1, 1], [], []>} : vector<16x8xf32>, vector<8x32xf32>, vector<16x32xf32> -> vector<16x32xf32>
    %136 = arith.addf %115, %135 : vector<16x32xf32>
    %137 = vector.extract_strided_slice %51 {offsets = [32, 0], sizes = [1, 32], strides = [1, 1]} : vector<33x32xf32> to vector<1x32xf32>
    %138 = vector.broadcast %137 : vector<1x32xf32> to vector<16x32xf32>
    %139 = arith.addf %136, %138 : vector<16x32xf32>
    %c0_45 = arith.constant 0 : index
    %c0_46 = arith.constant 0 : index
    %140 = vector.load %arg6[%c0_45, %c0_46] : memref<16x32xf32, #tpu.memory_space<vmem>>, vector<16x32xf32>
    tpu.vector_store %arg6[%c0_45, %c0_46], %139 {strides = array<i32>} : memref<16x32xf32, #tpu.memory_space<vmem>>, vector<16x32xf32>,
    return
  }
  func.func @transform_0(%arg0: i32) -> (i32, i32) {
    %c0_i32 = arith.constant 0 : i32
    %c0_i32_0 = arith.constant 0 : i32
    %c0_i32_1 = arith.constant 0 : i32
    return %c0_i32, %c0_i32_0 : i32, i32
  }
  func.func @transform_1(%arg0: i32) -> (i32, i32) {
    %c0_i32 = arith.constant 0 : i32
    %c0_i32_0 = arith.constant 0 : i32
    %c0_i32_1 = arith.constant 0 : i32
    return %c0_i32, %c0_i32_0 : i32, i32
  }
  func.func @transform_2(%arg0: i32) -> (i32, i32) {
    %c0_i32 = arith.constant 0 : i32
    %c0_i32_0 = arith.constant 0 : i32
    %c0_i32_1 = arith.constant 0 : i32
    return %c0_i32, %c0_i32_0 : i32, i32
  }
  func.func @transform_3(%arg0: i32) -> (i32, i32) {
    %c0_i32 = arith.constant 0 : i32
    %c0_i32_0 = arith.constant 0 : i32
    %c0_i32_1 = arith.constant 0 : i32
    return %c0_i32, %c0_i32_0 : i32, i32
  }
  func.func @transform_4(%arg0: i32) -> (i32, i32) {
    %c0_i32 = arith.constant 0 : i32
    %c0_i32_0 = arith.constant 0 : i32
    %c0_i32_1 = arith.constant 0 : i32
    return %c0_i32, %c0_i32_0 : i32, i32
  }
  func.func @transform_5(%arg0: i32) -> (i32, i32) {
    %c0_i32 = arith.constant 0 : i32
    %c0_i32_0 = arith.constant 0 : i32
    %c0_i32_1 = arith.constant 0 : i32
    return %c0_i32, %c0_i32_0 : i32, i32
  }
}

</mosaic_0001>

<bundles_post_ra>
// kernel: cross_attention.1
= control target key start
LH: loop header
LB: loop body
LE: loop exit
PB: predicated region body
PF: predicated region fallthrough
CT: control target
= control target key end

     0   :  { %vm55_vm0 = vcmask 523264   ;;  %s2901_s0 = inlined_call_operand.vmem [shape: f32[16,32], index: 0, kind: input, shape index: {}]   ;;  %s2902_s1 = inlined_call_operand.vmem [shape: f32[32,64], index: 1, kind: input, shape index: {}]   ;;  %s2903_s2 = inlined_call_operand.vmem [shape: f32[33,32], index: 2, kind: input, shape index: {}]   ;;  %s2904_s3 = inlined_call_operand.vmem [shape: f32[65,64], index: 3, kind: input, shape index: {}]   ;;  %s2905_s4 = inlined_call_operand.vmem [shape: f32[33,32], index: 4, kind: input, shape index: {}]   ;;  %s2906_s5 = inlined_call_operand.hbm [shape: f32[16,32], index: 5, kind: output, shape index: {}]  }
   0x1   :  { %v51_v0 = vld [vmem:[%s2902_s1] sm:$0xff]  ;;  %v53_v1 = vld [vmem:[%s2902_s1 + $0x10] sm:$0xff]  ;;  %v52_v2 = vld [vmem:[%s2902_s1 + $0x8] sm:$0xff] }
   0x2   :  { %v56_v3 = vsel %vm55_vm0, %v51_v0, 0.0  ;;  %v62_v4 = vsel %vm55_vm0, %v53_v1, 0.0  ;;  %v54_v5 = vld [vmem:[%s2902_s1 + $0x18] sm:$0xff] }
   0x3   :  { %57 = vadd.xlane.f32.xlu0 %v56_v3  ;;  %63 = vadd.xlane.f32.xlu1 %v62_v4 }
   0x4   :  { %10 = vsyncpa [#allocation3], 0  ;;  %v59_v6 = vsel %vm55_vm0, %v52_v2, 0.0  ;;  %v65_v7 = vsel %vm55_vm0, %v54_v5, 0.0  ;;  %v21_v8 = vld [vmem:[%s2901_s0] sm:$0xff]  ;;  %vm23_vm1 = vcmask 261120  }
   0x5   :  { %v22_v9 = vld [vmem:[%s2901_s0 + $0x8] sm:$0xff]  ;;  %v24_v10 = vsel %vm23_vm1, %v21_v8, 0.0  ;;  %v199_v42 = vld [vmem:[%s2904_s3] sm:$0xff]  ;;  %v201_v45 = vld [vmem:[%s2904_s3 + $0x10] sm:$0xff]  ;;  %vm2576_vm2 = vmmov 0   ;;  %vm314_vm3 = vcmask 64512  }
   0x6   :  { %v27_v11 = vsel %vm23_vm1, %v22_v9, 0.0  ;;  %v200_v43 = vld [vmem:[%s2904_s3 + $0x8] sm:$0xff]  ;;  %v202_v46 = vld [vmem:[%s2904_s3 + $0x18] sm:$0xff]  ;;  %v203_v48 = vld [vmem:[%s2904_s3 + $0x20] sm:$0xff]  ;;  %vm475_vm5 = vcmask 130048   ;;  %s2579_s0 = smov 120  }
   0x7   :  { %60 = vadd.xlane.f32.xlu0 %v59_v6  ;;  %66 = vadd.xlane.f32.xlu1 %v65_v7  ;;  %v2346_v44 = vpack.c.bf16 %v200_v43, %v199_v42  ;;  %v2350_v47 = vpack.c.bf16 %v202_v46, %v201_v45  ;;  %v204_v49 = vld [vmem:[%s2904_s3 + $0x28] sm:$0xff]  ;;  %v205_v51 = vld [vmem:[%s2904_s3 + $0x30] sm:$0xff]  ;;  %v206_v52 = vld [vmem:[%s2904_s3 + $0x38] sm:$0xff]  ;;  %s2580_s1 = smov 88   ;;  %s2581_s30 = smov 112  }
   0x8   :  { %v2354_v50 = vpack.c.bf16 %v204_v49, %v203_v48  ;;  %v2358_v53 = vpack.c.bf16 %v206_v52, %v205_v51  ;;  %v109_v54 = vld [vmem:[%s2903_s2] sm:$0xff]  ;;  %v110_v55 = vld [vmem:[%s2903_s2 + $0x8] sm:$0xff]  ;;  %v111_v57 = vld [vmem:[%s2903_s2 + $0x10] sm:$0xff]  ;;  %s2582_s10 = smov 80   ;;  %s2583_s11 = smov 104  }
   0x9   :  { %2347 = vmatprep.subr.bf16.mxu1 %v2346_v44  ;;  %v2338_v56 = vpack.c.bf16 %v110_v55, %v109_v54  ;;  %v112_v58 = vld [vmem:[%s2903_s2 + $0x18] sm:$0xff]  ;;  %vm2731_vm4 = vmpackc.low %vm314_vm3, %vm314_vm3  ;;  %s2584_s14 = smov 72   ;;  %s2585_s19 = smov [#allocation2]  }
   0xa   :  { %2349 = vmatpush3.bf16.msra.mxu1 %v2346_v44  ;;  %v2342_v59 = vpack.c.bf16 %v112_v58, %v111_v57  ;;  %s2035_s20 = sshll.u32 %s2585_s19, 4  ;;  %s2036_s20 = int_to_ptr.vmem [resolvable:$true] %s2035_s20 }
   0xb   :  { %25 = vadd.xlane.f32.xlu0 %v24_v10  ;;  %28 = vadd.xlane.f32.xlu1 %v27_v11  ;;  %s2551_s21 = scalar_lea.vmem %s2036_s20, 256  ;;  %p2556_p1 = scmp.lt.s32.totalorder %s2036_s20, %s2036_s20 }
   0xc   :  { %2351 = vmatprep.subr.bf16.mxu1 %v2350_v47  ;;  %2339 = vmatprep.subr.bf16.mxu0 %v2338_v56  ;;  %p2552_p0 = scmp.ne.s32.totalorder %s2036_s20, %s2551_s21  ;;  %p2557_p2 = scmp.lt.s32.totalorder %s2551_s21, %s2551_s21 }
   0xd   :  { %2341 = vmatpush3.bf16.msra.mxu0 %v2338_v56 }
   0xe   :  { %2353 = vmatpush3.bf16.msra.mxu1 %v2350_v47  ;;  %2343 = vmatprep.subr.bf16.mxu0 %v2342_v59  ;;  %p2558_p3 = por %p2557_p2, %p2556_p1 }
   0xf   :  { %2355 = vmatprep.subr.bf16.mxu1 %v2354_v50 }
  0x10   :  { %p2559_p4 = pnand %p2558_p3, %p2552_p0 }
  0x11   :  { %2345 = vmatpush3.bf16.msra.mxu0 %v2342_v59 }
  0x12   :  { %2357 = vmatpush3.bf16.msra.mxu1 %v2354_v50 }
  0x13   :  { %2359 = vmatprep.subr.bf16.mxu1 %v2358_v53 }
  0x16   :  { %2361 = vmatpush3.bf16.msra.mxu1 %v2358_v53 }
  0x90   :  { %v58_v12 = vpop.xlane.xlu0 %57  ;;  %v64_v13 = vpop.xlane.xlu1 %63 }
  0x91   :  { %v69_v14 = vmul.f32 0.015625, %v58_v12  ;;  %v71_v15 = vmul.f32 0.015625, %v64_v13 }
  0x93   :  { %v2642_v16 = vsub.f32 %v51_v0, %v69_v14  ;;  %v2644_v17 = vsub.f32 %v53_v1, %v71_v15 }
  0x94   :  { %v61_v18 = vpop.xlane.xlu0 %60  ;;  %v67_v19 = vpop.xlane.xlu1 %66 }
  0x95   :  { %v70_v20 = vmul.f32 0.015625, %v61_v18  ;;  %v72_v21 = vmul.f32 0.015625, %v67_v19  ;;  %v77_v22 = vmul.f32 %v2642_v16, %v2642_v16  ;;  %v79_v23 = vmul.f32 %v2644_v17, %v2644_v17 }
  0x97   :  { %v2650_v24 = vsub.f32 %v52_v2, %v70_v20  ;;  %v2652_v25 = vsub.f32 %v54_v5, %v72_v21  ;;  %v81_v26 = vsel %vm55_vm0, %v77_v22, 0.0  ;;  %v87_v29 = vsel %vm55_vm0, %v79_v23, 0.0 }
  0x98   :  { %82 = vadd.xlane.f32.xlu0 %v81_v26  ;;  %v26_v27 = vpop.xlane.xlu0 %25  ;;  %v29_v28 = vpop.xlane.xlu1 %28 }
  0x99   :  { %v31_v30 = vmul.f32 0.03125, %v26_v27  ;;  %v78_v31 = vmul.f32 %v2650_v24, %v2650_v24  ;;  %v32_v32 = vmul.f32 0.03125, %v29_v28  ;;  %v80_v33 = vmul.f32 %v2652_v25, %v2652_v25 }
  0x9b   :  { %v2660_v34 = vsub.f32 %v21_v8, %v31_v30  ;;  %v84_v35 = vsel %vm55_vm0, %v78_v31, 0.0  ;;  %v2663_v36 = vsub.f32 %v22_v9, %v32_v32  ;;  %v90_v37 = vsel %vm55_vm0, %v80_v33, 0.0 }
  0x9c   :  { %85 = vadd.xlane.f32.xlu1 %v84_v35  ;;  %88 = vadd.xlane.f32.xlu0 %v87_v29 }
  0x9d   :  { %v35_v38 = vmul.f32 %v2660_v34, %v2660_v34  ;;  %v36_v39 = vmul.f32 %v2663_v36, %v2663_v36 }
  0x9f   :  { %v37_v40 = vsel %vm23_vm1, %v35_v38, 0.0  ;;  %v40_v41 = vsel %vm23_vm1, %v36_v39, 0.0 }
  0xa0   :  { %91 = vadd.xlane.f32.xlu1 %v90_v37  ;;  %38 = vadd.xlane.f32.xlu0 %v37_v40  ;;  %v2046_v40 = vld [vmem:[%s2903_s2 + $0x20] ss:$0 sm:$0xff]  ;;  %s2578_s2 = smov 96  }
  0xa4   :  { %41 = vadd.xlane.f32.xlu1 %v40_v41 }
 0x125   :  { %v83_v60 = vpop.xlane.xlu0 %82 }
 0x126   :  { %v93_v61 = vmul.f32 0.015625, %v83_v60 }
 0x128   :  { %v97_v62 = vadd.f32 1e-05, %v93_v61 }
 0x129   :  { %v86_v63 = vpop.xlane.xlu1 %85  ;;  %v89_v0 = vpop.xlane.xlu0 %88 }
 0x12a   :  { %2507 = vrsqrt.f32 %v97_v62  ;;  %v94_v1 = vmul.f32 0.015625, %v86_v63  ;;  %v95_v2 = vmul.f32 0.015625, %v89_v0 }
 0x12c   :  { %v98_v3 = vadd.f32 1e-05, %v94_v1  ;;  %v99_v4 = vadd.f32 1e-05, %v95_v2 }
 0x12d   :  { %v92_v5 = vpop.xlane.xlu1 %91  ;;  %v39_v6 = vpop.xlane.xlu0 %38 }
 0x12e   :  { %2509 = vrsqrt.f32 %v98_v3  ;;  %v96_v7 = vmul.f32 0.015625, %v92_v5  ;;  %v43_v8 = vmul.f32 0.03125, %v39_v6 }
 0x12f   :  { %2511 = vrsqrt.f32 %v99_v4 }
 0x130   :  { %v100_v9 = vadd.f32 1e-05, %v96_v7  ;;  %v45_v10 = vadd.f32 1e-05, %v43_v8 }
 0x131   :  { %v42_v11 = vpop.xlane.xlu1 %41 }
 0x132   :  { %2513 = vrsqrt.f32 %v100_v9  ;;  %v44_v12 = vmul.f32 0.03125, %v42_v11 }
 0x133   :  { %2515 = vrsqrt.f32 %v45_v10 }
 0x134   :  { %v2508_v13 = vpop.eup %2507  ;;  %v46_v14 = vadd.f32 1e-05, %v44_v12 }
 0x135   :  { %v105_v15 = vmul.f32 %v2508_v13, %v2642_v16 }
 0x136   :  { %2517 = vrsqrt.f32 %v46_v14 }
 0x137   :  { %2200 = vmatprep.mubr.msk.f32.mxu1 %vm55_vm0, %v105_v15 }
 0x138   :  { %v2510_v18 = vpop.eup %2509 }
 0x139   :  { %v2512_v19 = vpop.eup %2511  ;;  %v106_v20 = vmul.f32 %v2510_v18, %v2650_v24  ;;  %v2577_v24 = vmov 0.0  }
 0x13a   :  { %v107_v21 = vmul.f32 %v2512_v19, %v2644_v17  ;;  %v2575_v17 = vmov 0.0|0.0  }
 0x13b   :  { %2201 = vmatmul.mubr.msk.f32.vlgmr.msra.gmra.mrb[0].mxu1 %vm55_vm0, %v106_v20  ;;  %2362 = vmatprep.subr.bf16.mxu0 %v2575_v17 }
 0x13c   :  { %v2514_v22 = vpop.eup %2513  ;;  %2203 = vmatprep.mubr.msk.f32.mxu1 %vm55_vm0, %v107_v21  ;;  %2370 = vmatprep.subr.bf16.mxu1 %v2575_v17 }
 0x13d   :  { %v2516_v23 = vpop.eup %2515  ;;  %v108_v26 = vmul.f32 %v2514_v22, %v2652_v25  ;;  %v2049_v25 = vld [vmem:[%s2904_s3 + $0x40] ss:$0 sm:$0xff] }
 0x13e   :  { %v49_v27 = vmul.f32 %v2516_v23, %v2660_v34 }
 0x13f   :  { %2204 = vmatmul.mubr.msk.f32.gmra.mrb[2].mxu1 %vm55_vm0, %v108_v26 }
 0x140   :  { %v2518_v16 = vpop.eup %2517  ;;  %2181 = vmatprep.mubr.msk.f32.mxu0 %vm23_vm1, %v49_v27  ;;  %2224 = vmatprep.mubr.msk.f32.mxu1 %vm2576_vm2, %v2577_v24 }
 0x141   :  { %v50_v28 = vmul.f32 %v2518_v16, %v2663_v36 }
 0x143   :  { %2182 = vmatmul.mubr.msk.f32.vlgmr.msra.gmra.mrb[0].mxu0 %vm23_vm1, %v50_v28 }
 0x144   :  { %2210 = vmatprep.mubr.msk.f32.mxu0 %vm2576_vm2, %v2577_v24 }
 0x20e   :  { %v2202_v29 = vpop.f32.mrb[0].mxu1 }
 0x20f   :  { %v296_v30 = vadd.f32 %v2202_v29, %v2049_v25  ;;  %v290_v31 = vpop.f32.mrb[1].mxu1 }
 0x210   :  { %v291_v32 = vadd.f32 %v2049_v25, %v290_v31 }
 0x212   :  { %v2205_v34 = vpop.f32.mrb[2].mxu1  ;;  %v2363_v35 = vpack.c.bf16 %v296_v30, %v291_v32  ;;  %v2735_v36 = vpack.i.bf16 %v296_v30, %v291_v32 }
 0x213   :  { %v306_v37 = vadd.f32 %v2205_v34, %v2049_v25  ;;  %v300_v38 = vpop.f32.mrb[3].mxu1 }
 0x214   :  { %v301_v39 = vadd.f32 %v2049_v25, %v300_v38  ;;  %2365 = vmatpush3.bf16.xpose.msk.msra.mxu0 %vm2731_vm4, %v2363_v35 }
 0x215   :  { %2366 = vmatprep.subr.bf16.mxu0 %v2575_v17 }
 0x216   :  { %v2183_v41 = vpop.f32.mrb[0].mxu0  ;;  %v2367_v42 = vpack.c.bf16 %v306_v37, %v301_v39  ;;  %v2743_v43 = vpack.i.bf16 %v306_v37, %v301_v39 }
 0x217   :  { %v190_v44 = vpop.f32.mrb[1].mxu0  ;;  %v2754_v46 = vadd.f32 %v2183_v41, %v2046_v40 }
 0x218   :  { %v2745_v45 = vadd.f32 %v2046_v40, %v190_v44 }
 0x21b   :  { %2211 = vmatmul.mubr.msk.f32.vlgmr.msra.gmra.mrb[2].mxu0 %vm314_vm3, %v2745_v45 }
 0x21c   :  { %2369 = vmatpush3.bf16.xpose.msk.msra.mxu0 %vm2731_vm4, %v2367_v42  ;;  %2217 = vmatprep.mubr.msk.f32.mxu0 %vm2576_vm2, %v2577_v24 }
 0x21d   :  { %2373 = vmatprep.subr.bf16.mxu0 %v2575_v17 }
 0x223   :  { %2218 = vmatmul.mubr.msk.f32.vlgmr.msra.gmra.mrb[4].mxu0 %vm314_vm3, %v2754_v46 }
 0x224   :  { %2231 = vmatprep.mubr.msk.f32.mxu0 %vm2576_vm2, %v2577_v24 }
 0x2ee   :  { %v390_v47 = vpop.f32.mrb[2].mxu0 }
 0x2ef   :  { %v473_v48 = vmul.f32 0.35355338, %v390_v47  ;;  %v2212_v49 = vpop.f32.mrb[3].mxu0 }
 0x2f1   :  { %v476_v50 = vsel %vm475_vm5, %v473_v48, -inf }
 0x2f2   :  { %477 = vmax.xlane.f32.xlu0 %v476_v50 }
 0x2f6   :  { %v469_v51 = vpop.f32.mrb[4].mxu0 }
 0x2f7   :  { %v474_v52 = vmul.f32 0.35355338, %v469_v51  ;;  %v2219_v53 = vpop.f32.mrb[5].mxu0 }
 0x2f9   :  { %v479_v54 = vsel %vm475_vm5, %v474_v52, -inf }
 0x2fa   :  { %480 = vmax.xlane.f32.xlu1 %v479_v54 }
 0x30b   :  { %2443 = vrot.lane.b32.xlu1 %v2743_v43, %s2578_s2 }
 0x30f   :  { %2448 = vrot.lane.b32.xlu1 %v2735_v36, %s2579_s0 }
 0x313   :  { %2453 = vrot.lane.b32.xlu1 %v2743_v43, %s2579_s0 }
 0x37f   :  { %v478_v55 = vpop.xlane.xlu0 %477 }
 0x380   :  { %v482_v56 = vsub.f32 %v473_v48, %v478_v55 }
 0x382   :  { %v484_v57 = vmul.f32 1.442695, %v482_v56 }
 0x384   :  { %2519 = vpow2.f32 %v484_v57 }
 0x387   :  { %v481_v58 = vpop.xlane.xlu1 %480 }
 0x388   :  { %v483_v59 = vsub.f32 %v474_v52, %v481_v58 }
 0x38a   :  { %v486_v60 = vmul.f32 1.442695, %v483_v59 }
 0x38b   :  { %v2444_v61 = vpop.permute.xlu1 %2443 }
 0x38c   :  { %2521 = vpow2.f32 %v486_v60  ;;  %v2446_v62 = vunpack.i.h.bf16 %v2444_v61  ;;  %v2445_v63 = vunpack.i.l.bf16 %v2444_v61 }
 0x38e   :  { %v2520_v0 = vpop.eup %2519  ;;  %v2374_v1 = vpack.c.bf16 %v2446_v62, %v2445_v63 }
 0x38f   :  { %v488_v2 = vsel %vm475_vm5, %v2520_v0, 0.0  ;;  %v2449_v5 = vpop.permute.xlu1 %2448 }
 0x390   :  { %489 = vadd.xlane.f32.xlu0 %v488_v2  ;;  %2375 = vmatpush3.bf16.msra.mxu0 %v2374_v1  ;;  %v2451_v14 = vunpack.i.h.bf16 %v2449_v5  ;;  %v2450_v15 = vunpack.i.l.bf16 %v2449_v5  ;;  %v310_v2 = vld [vmem:[%s2905_s4 + $0x8] sm:$0xff] }
 0x391   :  { %2380 = vmatprep.subr.bf16.mxu0 %v2575_v17 }
 0x392   :  { %v2377_v19 = vpack.c.bf16 %v2451_v14, %v2450_v15 }
 0x393   :  { %v2454_v7 = vpop.permute.xlu1 %2453 }
 0x394   :  { %v2456_v20 = vunpack.i.h.bf16 %v2454_v7  ;;  %v2455_v21 = vunpack.i.l.bf16 %v2454_v7 }
 0x396   :  { %v2522_v3 = vpop.eup %2521  ;;  %v2381_v26 = vpack.c.bf16 %v2456_v20, %v2455_v21 }
 0x397   :  { %v491_v4 = vsel %vm475_vm5, %v2522_v3, 0.0 }
 0x398   :  { %492 = vadd.xlane.f32.xlu1 %v491_v4 }
 0x3a6   :  { %2438 = vrot.lane.b32.xlu0 %v2735_v36, %s2578_s2 }
 0x3a9   :  { %738 = vrot.lane.b32.xlu1 %v2754_v46, %s2579_s0 }
 0x3aa   :  { %656 = vrot.lane.b32.xlu0 %v2745_v45, %s2579_s0 }
 0x41d   :  { %v490_v6 = vpop.xlane.xlu0 %489 }
 0x41e   :  { %2523 = vrcp.f32 %v490_v6 }
 0x421   :  { %v2439_v8 = vpop.permute.xlu0 %2438 }
 0x422   :  { %v2441_v9 = vunpack.i.h.bf16 %v2439_v8  ;;  %v2440_v10 = vunpack.i.l.bf16 %v2439_v8 }
 0x424   :  { %v2371_v11 = vpack.c.bf16 %v2441_v9, %v2440_v10  ;;  %v309_v10 = vld [vmem:[%s2905_s4] sm:$0xff] }
 0x425   :  { %v493_v12 = vpop.xlane.xlu1 %492  ;;  %v657_v27 = vpop.permute.xlu0 %656 }
 0x426   :  { %2525 = vrcp.f32 %v493_v12  ;;  %2372 = vmatpush3.bf16.msra.mxu1 %v2371_v11 }
 0x427   :  { %2376 = vmatprep.subr.bf16.mxu1 %v2575_v17 }
 0x428   :  { %v2524_v13 = vpop.eup %2523 }
 0x429   :  { %v496_v18 = vmul.f32 %v2524_v13, %v2520_v0  ;;  %v739_v16 = vpop.permute.xlu1 %738 }
 0x42b   :  { %2225 = vmatmul.mubr.msk.f32.vlgmr.msra.gmra.mrb[4].mxu1 %vm475_vm5, %v496_v18 }
 0x42c   :  { %2238 = vmatprep.mubr.msk.f32.mxu1 %vm2576_vm2, %v2577_v24 }
 0x42f   :  { %2379 = vmatpush3.bf16.xpose.msk.msra.mxu1 %vm2731_vm4, %v2377_v19 }
 0x430   :  { %v2526_v22 = vpop.eup %2525  ;;  %2384 = vmatprep.subr.bf16.mxu1 %v2575_v17 }
 0x431   :  { %v497_v23 = vmul.f32 %v2526_v22, %v2522_v3 }
 0x433   :  { %2232 = vmatmul.mubr.msk.f32.vlgmr.msra.gmra.mrb[6].mxu0 %vm475_vm5, %v497_v23 }
 0x434   :  { %2383 = vmatpush3.bf16.xpose.msk.msra.mxu0 %vm2731_vm4, %v2381_v26  ;;  %2245 = vmatprep.mubr.msk.f32.mxu0 %vm2576_vm2, %v2577_v24 }
 0x435   :  { %2387 = vmatprep.subr.bf16.mxu0 %v2575_v17 }
 0x436   :  { %2239 = vmatmul.mubr.msk.f32.vlgmr.msra.gmra.mrb[6].mxu1 %vm314_vm3, %v657_v27 }
 0x437   :  { %2252 = vmatprep.mubr.msk.f32.mxu1 %vm2576_vm2, %v2577_v24 }
 0x43b   :  { %2246 = vmatmul.mubr.msk.f32.vlgmr.msra.gmra.mrb[8].mxu0 %vm314_vm3, %v739_v16 }
 0x43c   :  { %2259 = vmatprep.mubr.msk.f32.mxu0 %vm2576_vm2, %v2577_v24 }
 0x4fe   :  { %v2790_v28 = vpop.f32.mrb[4].mxu1 }
 0x4ff   :  { %v2226_v25 = vpop.f32.mrb[5].mxu1 }
 0x506   :  { %v2792_v29 = vpop.f32.mrb[6].mxu0 }
 0x507   :  { %v2233_v30 = vpop.f32.mrb[7].mxu0 }
 0x509   :  { %v734_v31 = vpop.f32.mrb[6].mxu1 }
 0x50a   :  { %v820_v32 = vmul.f32 0.35355338, %v734_v31  ;;  %v2240_v34 = vpop.f32.mrb[7].mxu1 }
 0x50c   :  { %v822_v35 = vsel %vm475_vm5, %v820_v32, -inf }
 0x50d   :  { %823 = vmax.xlane.f32.xlu0 %v822_v35 }
 0x50e   :  { %v816_v37 = vpop.f32.mrb[8].mxu0 }
 0x50f   :  { %v821_v38 = vmul.f32 0.35355338, %v816_v37  ;;  %v2247_v39 = vpop.f32.mrb[9].mxu0 }
 0x511   :  { %v825_v40 = vsel %vm475_vm5, %v821_v38, -inf }
 0x512   :  { %826 = vmax.xlane.f32.xlu1 %v825_v40 }
 0x523   :  { %2463 = vrot.lane.b32.xlu1 %v2743_v43, %s2580_s1 }
 0x527   :  { %2468 = vrot.lane.b32.xlu1 %v2735_v36, %s2581_s30 }
 0x52b   :  { %2473 = vrot.lane.b32.xlu1 %v2743_v43, %s2581_s30 }
 0x52f   :  { %1246 = vrot.lane.b32.xlu1 %v2754_v46, %s2581_s30 }
 0x59a   :  { %v824_v41 = vpop.xlane.xlu0 %823 }
 0x59b   :  { %v828_v42 = vsub.f32 %v820_v32, %v824_v41 }
 0x59d   :  { %v830_v44 = vmul.f32 1.442695, %v828_v42  ;;  %v311_v42 = vld [vmem:[%s2905_s4 + $0x10] sm:$0xff] }
 0x59f   :  { %2527 = vpow2.f32 %v830_v44  ;;  %v827_v47 = vpop.xlane.xlu1 %826 }
 0x5a0   :  { %v829_v48 = vsub.f32 %v821_v38, %v827_v47 }
 0x5a2   :  { %v832_v49 = vmul.f32 1.442695, %v829_v48 }
 0x5a3   :  { %v2464_v50 = vpop.permute.xlu1 %2463 }
 0x5a4   :  { %2529 = vpow2.f32 %v832_v49  ;;  %v2466_v51 = vunpack.i.h.bf16 %v2464_v50  ;;  %v2465_v52 = vunpack.i.l.bf16 %v2464_v50 }
 0x5a6   :  { %v2388_v53 = vpack.c.bf16 %v2466_v51, %v2465_v52 }
 0x5a7   :  { %v2469_v63 = vpop.permute.xlu1 %2468 }
 0x5a8   :  { %2389 = vmatpush3.bf16.msra.mxu0 %v2388_v53  ;;  %v2471_v3 = vunpack.i.h.bf16 %v2469_v63  ;;  %v2470_v4 = vunpack.i.l.bf16 %v2469_v63 }
 0x5a9   :  { %v2528_v54 = vpop.eup %2527  ;;  %2390 = vmatprep.subr.bf16.mxu0 %v2575_v17 }
 0x5aa   :  { %v834_v55 = vsel %vm475_vm5, %v2528_v54, 0.0  ;;  %v2391_v8 = vpack.c.bf16 %v2471_v3, %v2470_v4 }
 0x5ab   :  { %835 = vadd.xlane.f32.xlu0 %v834_v55  ;;  %v2474_v14 = vpop.permute.xlu1 %2473 }
 0x5ac   :  { %v2476_v18 = vunpack.i.h.bf16 %v2474_v14  ;;  %v2475_v19 = vunpack.i.l.bf16 %v2474_v14 }
 0x5ae   :  { %v2530_v56 = vpop.eup %2529  ;;  %v2395_v20 = vpack.c.bf16 %v2476_v18, %v2475_v19 }
 0x5af   :  { %v837_v57 = vsel %vm475_vm5, %v2530_v56, 0.0  ;;  %v1247_v27 = vpop.permute.xlu1 %1246 }
 0x5b0   :  { %838 = vadd.xlane.f32.xlu0 %v837_v57 }
 0x5c6   :  { %2458 = vrot.lane.b32.xlu0 %v2735_v36, %s2580_s1 }
 0x5ca   :  { %1164 = vrot.lane.b32.xlu0 %v2745_v45, %s2581_s30 }
 0x638   :  { %v836_v58 = vpop.xlane.xlu0 %835 }
 0x639   :  { %2531 = vrcp.f32 %v836_v58 }
 0x63d   :  { %v839_v59 = vpop.xlane.xlu0 %838 }
 0x63e   :  { %2533 = vrcp.f32 %v839_v59 }
 0x641   :  { %v2459_v60 = vpop.permute.xlu0 %2458 }
 0x642   :  { %v2461_v61 = vunpack.i.h.bf16 %v2459_v60  ;;  %v2460_v62 = vunpack.i.l.bf16 %v2459_v60 }
 0x643   :  { %v2532_v0 = vpop.eup %2531 }
 0x644   :  { %v2385_v1 = vpack.c.bf16 %v2461_v61, %v2460_v62  ;;  %v842_v5 = vmul.f32 %v2532_v0, %v2528_v54 }
 0x645   :  { %v1165_v9 = vpop.permute.xlu0 %1164 }
 0x646   :  { %2386 = vmatpush3.bf16.msra.mxu1 %v2385_v1 }
 0x647   :  { %2262 = vmatprep.subr.mxu1 %v310_v2 }
 0x648   :  { %v2534_v6 = vpop.eup %2533 }
 0x649   :  { %v843_v7 = vmul.f32 %v2534_v6, %v2530_v56  ;;  %2253 = vmatmul.mubr.msk.f32.vlgmr.msra.gmra.mrb[8].mxu1 %vm475_vm5, %v842_v5 }
 0x64a   :  { %2263 = vmatpush3.msra.mxu1 %v310_v2 }
 0x64b   :  { %2260 = vmatmul.mubr.msk.f32.vlgmr.msra.gmra.mrb[10].mxu0 %vm475_vm5, %v843_v7  ;;  %2267 = vmatprep.subr.mxu1 %v309_v10 }
 0x64c   :  { %2393 = vmatpush3.bf16.xpose.msk.msra.mxu0 %vm2731_vm4, %v2391_v8  ;;  %2276 = vmatprep.mubr.msk.f32.mxu0 %vm2576_vm2, %v2577_v24 }
 0x64d   :  { %2398 = vmatprep.subr.bf16.mxu0 %v2575_v17 }
 0x653   :  { %2277 = vmatmul.mubr.msk.f32.vlgmr.msra.gmra.mrb[12].mxu0 %vm314_vm3, %v1165_v9 }
 0x654   :  { %2290 = vmatprep.mubr.msk.f32.mxu0 %vm2576_vm2, %v2577_v24 }
 0x71c   :  { %v919_v11 = vpop.f32.mrb[8].mxu1 }
 0x71d   :  { %v2254_v12 = vpop.f32.mrb[9].mxu1  ;;  %2264 = vmatprep.mubr.msk.f32.mxu1 %vm314_vm3, %v919_v11 }
 0x71e   :  { %v998_v13 = vpop.f32.mrb[10].mxu0 }
 0x71f   :  { %v2261_v15 = vpop.f32.mrb[11].mxu0  ;;  %2265 = vmatmul.mubr.msk.f32.vlgmr.msra.gmra.mrb[10].mxu1 %vm314_vm3, %v998_v13 }
 0x720   :  { %2268 = vmatpush3.msra.mxu1 %v309_v10  ;;  %2269 = vmatprep.mubr.msk.f32.mxu1 %vm314_vm3, %v2790_v28 }
 0x721   :  { %2394 = vmatprep.subr.bf16.mxu1 %v2575_v17 }
 0x726   :  { %v1242_v21 = vpop.f32.mrb[12].mxu0 }
 0x727   :  { %v1328_v22 = vmul.f32 0.35355338, %v1242_v21  ;;  %v2278_v23 = vpop.f32.mrb[13].mxu0  ;;  %2270 = vmatmul.mubr.msk.f32.vlgmr.msra.gmra.mrb[10].mxu1 %vm314_vm3, %v2792_v29 }
 0x728   :  { %2397 = vmatpush3.bf16.xpose.msk.msra.mxu1 %vm2731_vm4, %v2395_v20  ;;  %2283 = vmatprep.mubr.msk.f32.mxu1 %vm2576_vm2, %v2577_v24 }
 0x729   :  { %v1330_v26 = vsel %vm475_vm5, %v1328_v22, -inf  ;;  %2300 = vmatprep.subr.mxu1 %v311_v42 }
 0x72a   :  { %1331 = vmax.xlane.f32.xlu0 %v1330_v26 }
 0x72f   :  { %2284 = vmatmul.mubr.msk.f32.vlgmr.msra.gmra.mrb[12].mxu1 %vm314_vm3, %v1247_v27 }
 0x730   :  { %2301 = vmatpush3.msra.mxu1 %v311_v42 }
 0x731   :  { %2408 = vmatprep.subr.bf16.mxu1 %v2575_v17 }
 0x7b7   :  { %v1332_v16 = vpop.xlane.xlu0 %1331 }
 0x7b8   :  { %v1336_v28 = vsub.f32 %v1328_v22, %v1332_v16 }
 0x7ba   :  { %v1338_v25 = vmul.f32 1.442695, %v1336_v28 }
 0x7bc   :  { %2535 = vpow2.f32 %v1338_v25 }
 0x7c6   :  { %v2536_v30 = vpop.eup %2535 }
 0x7c7   :  { %v1342_v31 = vsel %vm475_vm5, %v2536_v30, 0.0 }
 0x7c8   :  { %1343 = vadd.xlane.f32.xlu0 %v1342_v31 }
 0x802   :  { %v1324_v29 = vpop.f32.mrb[12].mxu1 }
 0x803   :  { %v1329_v32 = vmul.f32 0.35355338, %v1324_v29  ;;  %v2285_v34 = vpop.f32.mrb[13].mxu1 }
 0x805   :  { %v1333_v35 = vsel %vm475_vm5, %v1329_v32, -inf }
 0x806   :  { %1334 = vmax.xlane.f32.xlu1 %v1333_v35 }
 0x817   :  { %2483 = vrot.lane.b32.xlu1 %v2743_v43, %s2582_s10 }
 0x81b   :  { %2488 = vrot.lane.b32.xlu1 %v2735_v36, %s2583_s11 }
 0x81f   :  { %2493 = vrot.lane.b32.xlu1 %v2743_v43, %s2583_s11 }
 0x823   :  { %1675 = vrot.lane.b32.xlu1 %v2754_v46, %s2583_s11 }
 0x855   :  { %v1344_v46 = vpop.xlane.xlu0 %1343 }
 0x893   :  { %v1335_v37 = vpop.xlane.xlu1 %1334 }
 0x894   :  { %v1337_v38 = vsub.f32 %v1329_v32, %v1335_v37 }
 0x896   :  { %v1340_v39 = vmul.f32 1.442695, %v1337_v38 }
 0x897   :  { %v2484_v47 = vpop.permute.xlu1 %2483 }
 0x898   :  { %2537 = vpow2.f32 %v1340_v39  ;;  %v2486_v52 = vunpack.i.h.bf16 %v2484_v47  ;;  %v2485_v53 = vunpack.i.l.bf16 %v2484_v47 }
 0x899   :  { %2539 = vrcp.f32 %v1344_v46 }
 0x89a   :  { %v2402_v56 = vpack.c.bf16 %v2486_v52, %v2485_v53 }
 0x89b   :  { %v2489_v57 = vpop.permute.xlu1 %2488 }
 0x89c   :  { %v2491_v59 = vunpack.i.h.bf16 %v2489_v57  ;;  %v2490_v60 = vunpack.i.l.bf16 %v2489_v57 }
 0x89e   :  { %v2405_v61 = vpack.c.bf16 %v2491_v59, %v2490_v60 }
 0x89f   :  { %v2494_v63 = vpop.permute.xlu1 %2493 }
 0x8a0   :  { %v2496_v0 = vunpack.i.h.bf16 %v2494_v63  ;;  %v2495_v1 = vunpack.i.l.bf16 %v2494_v63 }
 0x8a2   :  { %v2538_v40 = vpop.eup %2537  ;;  %v2409_v4 = vpack.c.bf16 %v2496_v0, %v2495_v1 }
 0x8a3   :  { %v1345_v41 = vsel %vm475_vm5, %v2538_v40, 0.0  ;;  %v2540_v51 = vpop.eup %2539  ;;  %v1676_v7 = vpop.permute.xlu1 %1675 }
 0x8a4   :  { %1346 = vadd.xlane.f32.xlu0 %v1345_v41  ;;  %v1350_v54 = vmul.f32 %v2540_v51, %v2536_v30  ;;  %v312_v30 = vld [vmem:[%s2905_s4 + $0x18] sm:$0xff] }
 0x8ba   :  { %2478 = vrot.lane.b32.xlu0 %v2735_v36, %s2582_s10 }
 0x8be   :  { %1593 = vrot.lane.b32.xlu0 %v2745_v45, %s2583_s11 }
 0x931   :  { %v1347_v44 = vpop.xlane.xlu0 %1346 }
 0x932   :  { %2541 = vrcp.f32 %v1347_v44  ;;  %v2094_v44 = vld [vmem:[%s2905_s4 + $0x20] ss:$0 sm:$0xff] }
 0x935   :  { %v2479_v48 = vpop.permute.xlu0 %2478 }
 0x936   :  { %v2481_v49 = vunpack.i.h.bf16 %v2479_v48  ;;  %v2480_v50 = vunpack.i.l.bf16 %v2479_v48 }
 0x938   :  { %v2399_v45 = vpack.c.bf16 %v2481_v49, %v2480_v50 }
 0x939   :  { %v1594_v62 = vpop.permute.xlu0 %1593 }
 0x93a   :  { %2400 = vmatpush3.bf16.msra.mxu0 %v2399_v45 }
 0x93b   :  { %2401 = vmatprep.subr.bf16.mxu0 %v2575_v17 }
 0x93c   :  { %v2542_v55 = vpop.eup %2541 }
 0x93d   :  { %2291 = vmatmul.mubr.msk.f32.vlgmr.msra.gmra.mrb[14].mxu0 %vm475_vm5, %v1350_v54  ;;  %v1351_v58 = vmul.f32 %v2542_v55, %v2538_v40 }
 0x93e   :  { %2403 = vmatpush3.bf16.msra.mxu0 %v2402_v56  ;;  %2297 = vmatprep.mubr.msk.f32.mxu0 %vm2576_vm2, %v2577_v24 }
 0x93f   :  { %2404 = vmatprep.subr.bf16.mxu0 %v2575_v17 }
 0x941   :  { %2298 = vmatmul.mubr.msk.f32.vlgmr.msra.gmra.mrb[16].mxu0 %vm475_vm5, %v1351_v58 }
 0x942   :  { %2309 = vmatprep.mubr.msk.f32.mxu0 %vm2576_vm2, %v2577_v24 }
 0x947   :  { %2407 = vmatpush3.bf16.xpose.msk.msra.mxu0 %vm2731_vm4, %v2405_v61 }
 0x948   :  { %2412 = vmatprep.subr.bf16.mxu0 %v2575_v17 }
 0x94e   :  { %2310 = vmatmul.mubr.msk.f32.vlgmr.msra.gmra.mrb[18].mxu0 %vm314_vm3, %v1594_v62 }
 0x94f   :  { %2323 = vmatprep.mubr.msk.f32.mxu0 %vm2576_vm2, %v2577_v24 }
 0xa10   :  { %v1427_v2 = vpop.f32.mrb[14].mxu0 }
 0xa11   :  { %v2292_v3 = vpop.f32.mrb[15].mxu0  ;;  %2302 = vmatprep.mubr.msk.f32.mxu1 %vm314_vm3, %v1427_v2 }
 0xa14   :  { %v1506_v5 = vpop.f32.mrb[16].mxu0 }
 0xa15   :  { %v2299_v6 = vpop.f32.mrb[17].mxu0  ;;  %2303 = vmatmul.mubr.msk.f32.vlgmr.msra.gmra.mrb[10].mxu1 %vm314_vm3, %v1506_v5 }
 0xa16   :  { %2411 = vmatpush3.bf16.xpose.msk.msra.mxu1 %vm2731_vm4, %v2409_v4  ;;  %2316 = vmatprep.mubr.msk.f32.mxu1 %vm2576_vm2, %v2577_v24 }
 0xa17   :  { %2415 = vmatprep.subr.bf16.mxu1 %v2575_v17 }
 0xa1d   :  { %2317 = vmatmul.mubr.msk.f32.vlgmr.msra.gmra.mrb[14].mxu1 %vm314_vm3, %v1676_v7 }
 0xa1e   :  { %2330 = vmatprep.mubr.msk.f32.mxu1 %vm2576_vm2, %v2577_v24 }
 0xa21   :  { %v1671_v8 = vpop.f32.mrb[18].mxu0 }
 0xa22   :  { %v1757_v9 = vmul.f32 0.35355338, %v1671_v8  ;;  %v2311_v10 = vpop.f32.mrb[19].mxu0 }
 0xa24   :  { %v1759_v11 = vsel %vm475_vm5, %v1757_v9, -inf }
 0xa25   :  { %1760 = vmax.xlane.f32.xlu0 %v1759_v11 }
 0xab2   :  { %v1761_v12 = vpop.xlane.xlu0 %1760 }
 0xab3   :  { %v1765_v33 = vsub.f32 %v1757_v9, %v1761_v12 }
 0xab5   :  { %v1767_v13 = vmul.f32 1.442695, %v1765_v33 }
 0xab7   :  { %2543 = vpow2.f32 %v1767_v13 }
 0xac1   :  { %v2544_v14 = vpop.eup %2543 }
 0xac2   :  { %v1771_v15 = vsel %vm475_vm5, %v2544_v14, 0.0 }
 0xac3   :  { %1772 = vadd.xlane.f32.xlu0 %v1771_v15 }
 0xaf0   :  { %v1753_v17 = vpop.f32.mrb[14].mxu1 }
 0xaf1   :  { %v1758_v18 = vmul.f32 0.35355338, %v1753_v17  ;;  %v2318_v19 = vpop.f32.mrb[15].mxu1 }
 0xaf3   :  { %v1762_v20 = vsel %vm475_vm5, %v1758_v18, -inf }
 0xaf4   :  { %1763 = vmax.xlane.f32.xlu1 %v1762_v20 }
 0xb05   :  { %2503 = vrot.lane.b32.xlu1 %v2743_v43, %s2584_s14 }
 0xb50   :  { %v1773_v43 = vpop.xlane.xlu0 %1772 }
 0xb81   :  { %v1764_v24 = vpop.xlane.xlu1 %1763 }
 0xb82   :  { %v1766_v21 = vsub.f32 %v1758_v18, %v1764_v24 }
 0xb84   :  { %v1769_v22 = vmul.f32 1.442695, %v1766_v21 }
 0xb85   :  { %v2504_v23 = vpop.permute.xlu1 %2503 }
 0xb86   :  { %2545 = vpow2.f32 %v1769_v22  ;;  %v2506_v26 = vunpack.i.h.bf16 %v2504_v23  ;;  %v2505_v27 = vunpack.i.l.bf16 %v2504_v23 }
 0xb87   :  { %2547 = vrcp.f32 %v1773_v43 }
 0xb88   :  { %v2416_v16 = vpack.c.bf16 %v2506_v26, %v2505_v27 }
 0xb8a   :  { %2417 = vmatpush3.bf16.msra.mxu1 %v2416_v16 }
 0xb8b   :  { %2333 = vmatprep.subr.mxu1 %v312_v30 }
 0xb90   :  { %v2546_v28 = vpop.eup %2545 }
 0xb91   :  { %v1774_v25 = vsel %vm475_vm5, %v2546_v28, 0.0  ;;  %v2548_v35 = vpop.eup %2547 }
 0xb92   :  { %1775 = vadd.xlane.f32.xlu0 %v1774_v25  ;;  %v1779_v38 = vmul.f32 %v2548_v35, %v2544_v14 }
 0xba8   :  { %2498 = vrot.lane.b32.xlu0 %v2735_v36, %s2584_s14 }
 0xc1f   :  { %v1776_v31 = vpop.xlane.xlu0 %1775 }
 0xc20   :  { %2549 = vrcp.f32 %v1776_v31 }
 0xc23   :  { %v2499_v29 = vpop.permute.xlu0 %2498 }
 0xc24   :  { %v2501_v32 = vunpack.i.h.bf16 %v2499_v29  ;;  %v2500_v34 = vunpack.i.l.bf16 %v2499_v29 }
 0xc26   :  { %v2413_v37 = vpack.c.bf16 %v2501_v32, %v2500_v34 }
 0xc28   :  { %2414 = vmatpush3.bf16.msra.mxu0 %v2413_v37 }
 0xc2a   :  { %v2550_v39 = vpop.eup %2549 }
 0xc2b   :  { %v1780_v40 = vmul.f32 %v2550_v39, %v2546_v28  ;;  %2324 = vmatmul.mubr.msk.f32.vlgmr.msra.gmra.mrb[20].mxu0 %vm475_vm5, %v1779_v38 }
 0xc2d   :  { %2331 = vmatmul.mubr.msk.f32.vlgmr.msra.gmra.mrb[16].mxu1 %vm475_vm5, %v1780_v40 }
 0xc2e   :  { %2334 = vmatpush3.msra.mxu1 %v312_v30 }
 0xcfe   :  { %v1856_v36 = vpop.f32.mrb[20].mxu0 }
 0xcff   :  { %v2325_v41 = vpop.f32.mrb[21].mxu0  ;;  %2335 = vmatprep.mubr.msk.f32.mxu1 %vm314_vm3, %v1856_v36 }
 0xd00   :  { %v1935_v42 = vpop.f32.mrb[16].mxu1 }
 0xd01   :  { %v2332_v46 = vpop.f32.mrb[17].mxu1  ;;  %2336 = vmatmul.mubr.msk.f32.vlgmr.msra.gmra.mrb[10].mxu1 %vm314_vm3, %v1935_v42 }
 0xdd4   :  { %v2337_v47 = vpop.f32.mrb[10].mxu1 }
 0xdd5   :  { %v2027_v48 = vadd.f32 %v2337_v47, %v2094_v44  ;;  %v2011_v49 = vpop.f32.mrb[11].mxu1 }
 0xdd6   :  { %v2026_v50 = vadd.f32 %v2094_v44, %v2011_v49 }
 0xdd7   :  { %2029 = vst.msk [vmem:[#allocation2 + $0x8] sm:$0xff] %vm23_vm1, %v2027_v48 }
 0xdd8   :  { %2028 = vst.msk [vmem:[#allocation2] sm:$0xff] %vm23_vm1, %v2026_v50 }
 0xdd9   :  { %2562 = shalt.err (!%p2559_p4)
}
 0xdda   :  { %s2563_s23 = scalar_lea.hbm %s2906_s5, 256 }
 0xddb   :  { %p2564_p5 = scmp.ne.s32.totalorder %s2906_s5, %s2563_s23  ;;  %p2567_p6 = scmp.lt.u32.totalorder %s2563_s23, %s2906_s5 }
 0xddd   :  { %p2569_p7 = pnand %p2567_p6, %p2564_p5 }
 0xddf   :  { %2572 = shalt.err (!%p2569_p7)
}
 0xde0   :  { %s2586_s28 = smov 128   ;;  %s2587_s3 = smov 8  }
 0xde1   :  { %2041 = dma.vmem_to_hbm [thread:$0]  %s2036_s20, 256, %s2906_s5, [#allocation3], %s2586_s28, %s2586_s28, %s2587_s3  }
 0xde2   :  { %2573 = dma.done.wait [#allocation3], 256  }
 0xde3   :  { %2574 = vsyncadd [#allocation3], 4294967040 }
 0xde4   :  { %2045 = vsyncpa [#allocation3], 1 }

</bundles_post_ra>
